<compile_context>
chip_gen: v5e
topology: v5e:2x2
jax: 0.10.0
libtpu: 0.0.40
codegen_flags: <defaults>
</compile_context>

<pallas_src>
import functools
import math

import jax
import jax.numpy as jnp
from jax.experimental import pallas as pl
from jax.experimental.pallas import tpu as pltpu


def _dynconv_kernel(q_ref, w_ref, e_ref, xpad_hbm, o_ref, xwin_ref, sem,
                    *, B, K, H, TM, weight_softmax):
    """One time-tile of DynamicConv1dTBC.

    q_ref    : (TM*B, C)         VMEM  -- query/input rows of this tile
    w_ref    : (C, K*H)          VMEM  -- projection weight, column = k*H + h
    e_ref    : (H, C)            VMEM  -- one-hot head -> channel expansion (f32)
    xpad_hbm : ((Tp+K-1)*B, C)   HBM   -- time-padded input (manual halo DMA)
    o_ref    : (TM*B, C)         VMEM
    xwin_ref : ((TM+K-1)*B, C)   VMEM scratch
    sem      : DMA semaphore
    """
    i = pl.program_id(0)
    rows = TM * B
    win_rows = (TM + K - 1) * B
    C = q_ref.shape[1]

    # Kick off the DMA of this tile's haloed input window.  It overlaps with the
    # dynamic-filter matmul + softmax below.
    cp = pltpu.make_async_copy(xpad_hbm.at[pl.ds(i * rows, win_rows)],
                               xwin_ref, sem)
    cp.start()

    # --- dynamic filter prediction: ONE small matmul -> (rows, K*H) ----------
    q = q_ref[...].astype(jnp.float32)
    w = w_ref[...].astype(jnp.float32)
    logits = jnp.dot(q, w, preferred_element_type=jnp.float32)

    taps = [logits[:, k * H:(k + 1) * H] for k in range(K)]   # K x (rows, H)

    # --- softmax over the K taps, per (row, head) -----------------------------
    if weight_softmax:
        m = taps[0]
        for k in range(1, K):
            m = jnp.maximum(m, taps[k])
        exps = [jnp.exp(t - m) for t in taps]
        denom = exps[0]
        for k in range(1, K):
            denom = denom + exps[k]
        inv = 1.0 / denom                       # tiny (rows, H) divide, exact
        wts = [e * inv for e in exps]
    else:
        wts = taps

    e_mat = e_ref[...]                          # (H, C) one-hot, f32

    cp.wait()

    # --- convolution: out[r, c] = sum_k wts_k[r, head(c)] * x_pad[k*B + r, c] -
    acc = jnp.zeros((rows, C), jnp.float32)
    for k in range(K):
        # per-head weight -> per-channel weight on the MXU (one-hot expansion)
        wk = jnp.dot(wts[k], e_mat, preferred_element_type=jnp.float32)
        xk = xwin_ref[k * B:k * B + rows, :].astype(jnp.float32)
        acc = acc + wk * xk
    o_ref[...] = acc.astype(o_ref.dtype)


def dynamic_conv1d_tbc(x, w_proj, *, kernel_size, padding_l, num_heads,
                       weight_softmax=True, time_tile=None):
    """Forward pass of DynamicConv1dTBC (no incremental state, no conv_bias).

    x      : (T, B, C)  TBC layout
    w_proj : (H*K, C)   weight of the (bias-free) weight_linear, PyTorch layout
    """
    T, B, C = x.shape
    K, H = kernel_size, num_heads
    R = C // H
    assert R * H == C
    assert K <= T, "K > T fallback branch not implemented"
    assert 0 <= padding_l <= K - 1
    assert w_proj.shape == (H * K, C)

    itemsize = jnp.dtype(x.dtype).itemsize

    # --- time-tile selection (bounded VMEM, overlappable DMA) -----------------
    if time_tile is None:
        target_bytes = 2 * 1024 * 1024                      # ~2 MiB per q tile
        time_tile = max(1, target_bytes // max(1, B * C * itemsize))
    # keep the (TM*B, C) block's second-to-last dim a multiple of 8
    step = 8 // math.gcd(B, 8)
    TM = int(min(time_tile, T))
    TM = max(step, (TM // step) * step)
    n_tiles = -(-T // TM)                                   # cdiv
    Tp = n_tiles * TM

    x_p = jnp.pad(x, ((0, Tp - T), (0, 0), (0, 0))) if Tp != T else x

    # zero-pad time: padding_l on the left, K-1-padding_l on the right
    x_pad = jnp.pad(x_p, ((padding_l, K - 1 - padding_l), (0, 0), (0, 0)))

    q2d = x_p.reshape(Tp * B, C)
    x_pad2d = x_pad.reshape((Tp + K - 1) * B, C)

    # --- weight layout: (H*K, C) -> (C, K*Hp), column = k*Hp + h ---------------
    Hp = ((H + 7) // 8) * 8                                 # pad heads to sublane mult.
    w_khc = jnp.transpose(w_proj.reshape(H, K, C), (1, 0, 2))     # (K, H, C)
    w_khc = jnp.pad(w_khc, ((0, 0), (0, Hp - H), (0, 0)))         # (K, Hp, C)
    w_t = jnp.transpose(w_khc.reshape(K * Hp, C), (1, 0))         # (C, K*Hp)

    # one-hot head -> channel expansion matrix (rows for padded heads are zero)
    e_mat = (jnp.arange(C)[None, :] // R
             == jnp.arange(Hp)[:, None]).astype(jnp.float32)      # (Hp, C)

    kernel = functools.partial(
        _dynconv_kernel, B=B, K=K, H=Hp, TM=TM, weight_softmax=weight_softmax)

    flops = 2 * Tp * B * C * K * Hp          # logits matmul
    flops += K * 2 * Tp * B * Hp * C         # one-hot expansion matmuls
    flops += 2 * Tp * B * C * K              # conv multiply-accumulate
    bytes_accessed = (q2d.size + x_pad2d.size + Tp * B * C) * itemsize \
        + (w_t.size + e_mat.size) * 4

    out2d = pl.pallas_call(
        kernel,
        out_shape=jax.ShapeDtypeStruct((Tp * B, C), x.dtype),
        grid_spec=pltpu.PrefetchScalarGridSpec(
            num_scalar_prefetch=0,
            grid=(n_tiles,),
            in_specs=[
                pl.BlockSpec((TM * B, C), lambda i: (i, 0)),      # q tile
                pl.BlockSpec((C, K * Hp), lambda i: (0, 0)),      # projection weight
                pl.BlockSpec((Hp, C), lambda i: (0, 0)),          # one-hot expansion
                pl.BlockSpec(memory_space=pl.ANY),                # x_pad stays in HBM
            ],
            out_specs=pl.BlockSpec((TM * B, C), lambda i: (i, 0)),
            scratch_shapes=[
                pltpu.VMEM(((TM + K - 1) * B, C), x.dtype),       # haloed x window
                pltpu.SemaphoreType.DMA(()),
            ]),
        compiler_params=pltpu.CompilerParams(
            dimension_semantics=("parallel",)),
        cost_estimate=pl.CostEstimate(
            flops=int(flops),
            transcendentals=int(Tp * B * Hp * K) if weight_softmax else 0,
            bytes_accessed=int(bytes_accessed)),
    )(q2d, w_t, e_mat, x_pad2d)

    out = out2d.reshape(Tp, B, C)
    return out[:T] if Tp != T else out


def _reference(x, w_proj, *, kernel_size, padding_l, num_heads, weight_softmax):
    """Pure-JAX mirror of the PyTorch _forward_unfolded semantics."""
    T, B, C = x.shape
    K, H = kernel_size, num_heads
    R = C // H
    logits = jnp.einsum('tbc,oc->tbo', x, w_proj)          # (T, B, H*K)
    w = logits.reshape(T, B, H, K)
    if weight_softmax:
        w = jax.nn.softmax(w, axis=-1)
    x_pad = jnp.pad(x, ((padding_l, K - 1 - padding_l), (0, 0), (0, 0)))
    out = jnp.zeros((T, B, C), jnp.float32)
    for k in range(K):
        out = out + jnp.repeat(w[..., k], R, axis=-1) * x_pad[k:k + T]
    return out


if __name__ == "__main__":
    # Small, TPU-friendly example consistent with the module: T=16 timesteps,
    # B=8 batch, C=128 channels, H=4 heads, K=3 taps, "same" padding.
    T, B, C = 16, 8, 128
    H, K = 4, 3
    padding_l = K // 2

    key = jax.random.PRNGKey(0)
    kx, kw = jax.random.split(key)

    x = jax.random.normal(kx, (T, B, C), dtype=jnp.float32)

    # weight_linear: nn.Linear(C, H*K, bias=False) with xavier_uniform_ init.
    fan_in, fan_out = C, H * K
    bound = (6.0 / (fan_in + fan_out)) ** 0.5
    w_proj = jax.random.uniform(kw, (H * K, C), dtype=jnp.float32,
                                minval=-bound, maxval=bound)

    out = dynamic_conv1d_tbc(x, w_proj, kernel_size=K, padding_l=padding_l,
                             num_heads=H, weight_softmax=True, time_tile=4)
    out = jax.block_until_ready(out)

    ref = _reference(x, w_proj, kernel_size=K, padding_l=padding_l,
                     num_heads=H, weight_softmax=True)

    assert out.shape == (T, B, C)
    assert jnp.allclose(out, ref, atol=1e-5, rtol=1e-5), "mismatch vs reference"
    print("KERNEL_OK")
</pallas_src>

<mosaic_0001>
module attributes {stable_mosaic.version = 11 : i64} {
  func.func @_dynconv_kernel(%arg0: i32, %arg1: memref<32x128xf32, #tpu.memory_space<vmem>>, %arg2: memref<128x24xf32, #tpu.memory_space<vmem>>, %arg3: memref<8x128xf32, #tpu.memory_space<vmem>>, %arg4: memref<144x128xf32, #tpu.memory_space<any>>, %arg5: memref<32x128xf32, #tpu.memory_space<vmem>>, %arg6: memref<48x128xf32, #tpu.memory_space<vmem>>, %arg7: memref<!tpu.dma_semaphore, #tpu.memory_space<semaphore_mem>>) attributes {dimension_semantics = [#tpu.dimension_semantics<parallel>], iteration_bounds = array<i64: 4>, scalar_prefetch = 0 : i64, scratch_operands = 2 : i64, tpu.core_type = #tpu.core_type<tc>, window_params = [{transform_indices = @transform_0, window_bounds = array<i64: 32, 128>}, {pipeline_mode = #tpu.pipeline_mode<synchronous>, transform_indices = @transform_1, window_bounds = array<i64: 128, 24>}, {pipeline_mode = #tpu.pipeline_mode<synchronous>, transform_indices = @transform_2, window_bounds = array<i64: 8, 128>}, {}, {transform_indices = @transform_4, window_bounds = array<i64: 32, 128>}]} {
    %c32_i32 = arith.constant 32 : i32
    %0 = arith.muli %arg0, %c32_i32 : i32
    %c0_i32 = arith.constant 0 : i32
    %1 = tpu.memref_slice %arg4[%0, %c0_i32] : memref<144x128xf32, #tpu.memory_space<any>> -> memref<48x128xf32, #tpu.memory_space<any>>
    tpu.enqueue_dma source(%1 : memref<48x128xf32, #tpu.memory_space<any>>) target(%arg6 : memref<48x128xf32, #tpu.memory_space<vmem>>) target_semaphore(%arg7 : memref<!tpu.dma_semaphore, #tpu.memory_space<semaphore_mem>>)
    %c0 = arith.constant 0 : index
    %c0_0 = arith.constant 0 : index
    %2 = vector.load %arg1[%c0, %c0_0] : memref<32x128xf32, #tpu.memory_space<vmem>>, vector<32x128xf32>
    %c0_1 = arith.constant 0 : index
    %c0_2 = arith.constant 0 : index
    %3 = vector.load %arg2[%c0_1, %c0_2] : memref<128x24xf32, #tpu.memory_space<vmem>>, vector<128x24xf32>
    %cst = arith.constant dense<0.000000e+00> : vector<32x24xf32>
    %4 = tpu.matmul %2, %3, %cst {dimension_numbers = #tpu.dot_dimension_numbers<[1], [0], [0], [1], [0, 0, 1, 1], [], []>} : vector<32x128xf32>, vector<128x24xf32>, vector<32x24xf32> -> vector<32x24xf32>
    %5 = vector.extract_strided_slice %4 {offsets = [0, 0], sizes = [32, 8], strides = [1, 1]} : vector<32x24xf32> to vector<32x8xf32>
    %6 = vector.extract_strided_slice %4 {offsets = [0, 8], sizes = [32, 8], strides = [1, 1]} : vector<32x24xf32> to vector<32x8xf32>
    %7 = vector.extract_strided_slice %4 {offsets = [0, 16], sizes = [32, 8], strides = [1, 1]} : vector<32x24xf32> to vector<32x8xf32>
    %8 = arith.maximumf %5, %6 : vector<32x8xf32>
    %9 = arith.maximumf %8, %7 : vector<32x8xf32>
    %10 = arith.subf %5, %9 : vector<32x8xf32>
    %11 = math.exp %10 : vector<32x8xf32>
    %12 = arith.subf %6, %9 : vector<32x8xf32>
    %13 = math.exp %12 : vector<32x8xf32>
    %14 = arith.subf %7, %9 : vector<32x8xf32>
    %15 = math.exp %14 : vector<32x8xf32>
    %16 = arith.addf %11, %13 : vector<32x8xf32>
    %17 = arith.addf %16, %15 : vector<32x8xf32>
    %cst_3 = arith.constant 1.000000e+00 : f32
    %18 = vector.broadcast %cst_3 : f32 to vector<32x8xf32>
    %19 = arith.divf %18, %17 : vector<32x8xf32>
    %20 = arith.mulf %11, %19 : vector<32x8xf32>
    %21 = arith.mulf %13, %19 : vector<32x8xf32>
    %22 = arith.mulf %15, %19 : vector<32x8xf32>
    %c0_4 = arith.constant 0 : index
    %c0_5 = arith.constant 0 : index
    %23 = vector.load %arg3[%c0_4, %c0_5] : memref<8x128xf32, #tpu.memory_space<vmem>>, vector<8x128xf32>
    %c0_i32_6 = arith.constant 0 : i32
    %24 = tpu.memref_slice %arg4[%0, %c0_i32_6] : memref<144x128xf32, #tpu.memory_space<any>> -> memref<48x128xf32, #tpu.memory_space<any>>
    tpu.wait_dma2 semaphore(%arg7 : memref<!tpu.dma_semaphore, #tpu.memory_space<semaphore_mem>>) src(%24 : memref<48x128xf32, #tpu.memory_space<any>>) dst(%arg6 : memref<48x128xf32, #tpu.memory_space<vmem>>)
    %cst_7 = arith.constant 0.000000e+00 : f32
    %25 = vector.broadcast %cst_7 : f32 to vector<32x128xf32>
    %cst_8 = arith.constant dense<0.000000e+00> : vector<32x128xf32>
    %26 = tpu.matmul %20, %23, %cst_8 {dimension_numbers = #tpu.dot_dimension_numbers<[1], [0], [0], [1], [0, 0, 1, 1], [], []>} : vector<32x8xf32>, vector<8x128xf32>, vector<32x128xf32> -> vector<32x128xf32>
    %c0_9 = arith.constant 0 : index
    %c0_10 = arith.constant 0 : index
    %27 = vector.load %arg6[%c0_9, %c0_10] : memref<48x128xf32, #tpu.memory_space<vmem>>, vector<32x128xf32>
    %28 = arith.mulf %26, %27 : vector<32x128xf32>
    %29 = arith.addf %25, %28 : vector<32x128xf32>
    %cst_11 = arith.constant dense<0.000000e+00> : vector<32x128xf32>
    %30 = tpu.matmul %21, %23, %cst_11 {dimension_numbers = #tpu.dot_dimension_numbers<[1], [0], [0], [1], [0, 0, 1, 1], [], []>} : vector<32x8xf32>, vector<8x128xf32>, vector<32x128xf32> -> vector<32x128xf32>
    %c8 = arith.constant 8 : index
    %c0_12 = arith.constant 0 : index
    %31 = vector.load %arg6[%c8, %c0_12] : memref<48x128xf32, #tpu.memory_space<vmem>>, vector<32x128xf32>
    %32 = arith.mulf %30, %31 : vector<32x128xf32>
    %33 = arith.addf %29, %32 : vector<32x128xf32>
    %cst_13 = arith.constant dense<0.000000e+00> : vector<32x128xf32>
    %34 = tpu.matmul %22, %23, %cst_13 {dimension_numbers = #tpu.dot_dimension_numbers<[1], [0], [0], [1], [0, 0, 1, 1], [], []>} : vector<32x8xf32>, vector<8x128xf32>, vector<32x128xf32> -> vector<32x128xf32>
    %c16 = arith.constant 16 : index
    %c0_14 = arith.constant 0 : index
    %35 = vector.load %arg6[%c16, %c0_14] : memref<48x128xf32, #tpu.memory_space<vmem>>, vector<32x128xf32>
    %36 = arith.mulf %34, %35 : vector<32x128xf32>
    %37 = arith.addf %33, %36 : vector<32x128xf32>
    %c0_15 = arith.constant 0 : index
    %c0_16 = arith.constant 0 : index
    %38 = vector.load %arg5[%c0_15, %c0_16] : memref<32x128xf32, #tpu.memory_space<vmem>>, vector<32x128xf32>
    tpu.vector_store %arg5[%c0_15, %c0_16], %37 {strides = array<i32>} : memref<32x128xf32, #tpu.memory_space<vmem>>, vector<32x128xf32>,
    return
  }
  func.func @transform_0(%arg0: i32) -> (i32, i32) {
    %c0_i32 = arith.constant 0 : i32
    %c0_i32_0 = arith.constant 0 : i32
    return %arg0, %c0_i32 : i32, i32
  }
  func.func @transform_1(%arg0: i32) -> (i32, i32) {
    %c0_i32 = arith.constant 0 : i32
    %c0_i32_0 = arith.constant 0 : i32
    %c0_i32_1 = arith.constant 0 : i32
    return %c0_i32, %c0_i32_0 : i32, i32
  }
  func.func @transform_2(%arg0: i32) -> (i32, i32) {
    %c0_i32 = arith.constant 0 : i32
    %c0_i32_0 = arith.constant 0 : i32
    %c0_i32_1 = arith.constant 0 : i32
    return %c0_i32, %c0_i32_0 : i32, i32
  }
  func.func @transform_4(%arg0: i32) -> (i32, i32) {
    %c0_i32 = arith.constant 0 : i32
    %c0_i32_0 = arith.constant 0 : i32
    return %arg0, %c0_i32 : i32, i32
  }
}

</mosaic_0001>

<bundles_post_ra>
// kernel: tpu_custom_call.1
= control target key start
LH: loop header
LB: loop body
LE: loop exit
PB: predicated region body
PF: predicated region fallthrough
CT: control target
= control target key end

     0   :  { %9 = vsyncpa [#allocation5], 0  ;;  %s1408_s0 = inlined_call_operand.hbm [shape: f32[128,128], index: 0, kind: input, shape index: {}]   ;;  %s1409_s1 = inlined_call_operand.vmem [shape: f32[128,24], index: 1, kind: input, shape index: {}]   ;;  %s1410_s2 = inlined_call_operand.vmem [shape: f32[8,128], index: 2, kind: input, shape index: {}]   ;;  %s1411_s3 = inlined_call_operand.vmem [shape: f32[144,128], index: 3, kind: input, shape index: {}]   ;;  %s1412_s4 = inlined_call_operand.hbm [shape: f32[128,128], index: 4, kind: output, shape index: {}]  }
   0x1   :  { %11 = vsyncpa [#allocation5 + $0x1], 0 }
   0x2   :  { %12 = vsyncpa [#allocation6], 0 }
   0x3   :  { %14 = vsyncpa [#allocation6 + $0x1], 0  ;;  %s1045_s15 = smov 0   ;;  %s1047_s16 = smov 0  }
   0x4   :  { %s1049_s17 = smov 0   ;;  %s1051_s18 = smov 0  }
   0x5 LB: > { %s1066_s19 = sadd.s32 4294967295, %s1011_s18   ;;  %s798_s20 = sadd.s32 4294967294, %s1011_s18   ;;  %s1011_s18 = sphi %s1051_s18, %s1421_s18   ;;  %s1007_s17 = sphi %s1049_s17, %s1420_s17   ;;  %s1003_s16 = sphi %s1047_s16, %s1419_s16   ;;  %s999_s15 = sphi %s1045_s15, %s1418_s15  }
   0x6   : > { %s1070_s21 = sadd.s32 1, %s1011_s18   ;;  %s27_s22 = sadd.s32 1, %s1007_s17 }
   0x7   : > { %s24_s23 = ssub.s32 %s1011_s18, %s1070_s21  ;;  %p34_p0 = scmp.ne.s32.totalorder %s1007_s17, %s1003_s16 }
   0x8   : > { %p25_p1 = scmp.eq.s32.totalorder %s24_s23, 0  ;;  %p35_p2 = scmp.eq.s32.totalorder %s1011_s18, 0 }
   0x9   : > { %p40_p3 = scmp.ne.s32.totalorder %s1003_s16, %s999_s15  ;;  %p41_p4 = scmp.eq.s32.totalorder %s1066_s19, 0 }
   0xa   : > { %s1082_s24 = scalar_select %p25_p1, %s1007_s17, %s27_s22  }
   0xb   : > { %p1084_p5 = por %p35_p2, %p34_p0  ;;  %p1088_p6 = por %p41_p4, %p40_p3 }
   0xc   : > { %p106_p7 = scmp.eq.s32.totalorder %s1066_s19, 3  ;;  %p112_p8 = scmp.eq.s32.totalorder %s798_s20, 3 }
   0xd   : > { %p840_p9 = scmp.lt.s32.totalorder %s1011_s18, 4  ;;  %s138_s29 = sand.u32 1, %s1007_s17  }
   0xe   : > { %p1094_p10 = por %p106_p7, %p34_p0  ;;  %p1098_p11 = por %p112_p8, %p40_p3 }
   0xf   : > { %s826_s30 = sshll.u32 %s1011_s18, 5  ;;  %s801_s5 = sshll.u32 %s138_s29, 5 }
  0x10   : > { %s147_s8 = scalar_lea.hbm %s1408_s0, %s826_s30  ;;  %s142_s10 = scalar_lea.vmem [#allocation4], %s801_s5 }
  0x11   : > { %s148_s9 = sshll.u32 %s147_s8, 4  ;;  %s150_s11 = sshll.u32 %s142_s10, 4  ;;  %s149_s9 = int_to_ptr.hbm [resolvable:$true] %s148_s9  ;;  %s151_s11 = int_to_ptr.vmem [resolvable:$true] %s150_s11 }
  0x12   : > { %p1109_p12 = pnand %p840_p9, %p1084_p5  ;;  %p804_p13 = scmp.ge.s32.totalorder %s1011_s18, 1 }
  0x13   : > { %p158_p0 = scmp.lt.s32.totalorder %s1011_s18, 5  ;;  %s139_s13 = scalar_lea.sflag [#allocation5], %s138_s29 }
  0x14   : > { %s913_s14 = sshra.s32 %s149_s9, 4  ;;  %p917_p2 = pneg %p1109_p12  ;;  %s914_s14 = int_to_ptr.hbm [resolvable:$true] %s913_s14 }
  0x15   : > { %s915_s20 = scalar_lea.hbm %s914_s14, 32  ;;  %s920_s25 = scalar_lea.hbm %s1408_s0, 128 }
  0x16   : > { %p916_p1 = scmp.ne.s32.totalorder %s914_s14, %s915_s20  ;;  %p921_p5 = scmp.lt.s32.totalorder %s914_s14, %s1408_s0 }
  0x17   : > { %p922_p7 = scmp.lt.s32.totalorder %s920_s25, %s915_s20 }
  0x18   : > { %p918_p3 = pnand %p917_p2, %p916_p1 }
  0x19   : > { %p923_p8 = por %p922_p7, %p921_p5 }
  0x1a   : > { %p919_p4 = pneg %p918_p3 }
  0x1c   : > { %p924_p9 = pnand %p923_p8, %p919_p4 }
  0x1e   : > { %927 = shalt.err (!%p924_p9)
}
  0x1f   : > { %s1013_s29 = smov 128   ;;  %s1014_s6 = smov 8  }
  0x20   : > { %835 = dma.hbm_to_vmem [thread:$0]  (!%p1109_p12), %s149_s9, 512, %s151_s11, %s139_s13, %s1013_s29, %s1013_s29, %s1014_s6  }
  0x21   : > { %p159_p1 = pnand %p804_p13, %p158_p0 }
  0x22   : > { %s1130_s7 = sand.u32 (!%p159_p1), 1, %s1003_s16  }
  0x23   : > { %162 = sbr.rel (%p159_p1) target bundleno = 1012 (0x3f4), region = 32  ;;  %s805_s8 = sshll.u32 (!%p159_p1), %s1130_s7, 5 }
  0x24   : > { %s165_s10 = scalar_lea.sflag (!%p159_p1), [#allocation5], %s1130_s7  ;;  %s1134_s14 = scalar_lea.vmem (!%p159_p1), [#allocation4], %s805_s8 }
  0x28   : > { %988 = dma.done.wait (%p1088_p6), %s165_s10, 512  }
  0x29   : > { %990 = vsyncadd (%p1088_p6), %s165_s10, 4294966784  ;;  %s807_s9 = sshll.u32 %s1066_s19, 5  ;;  %s1158_s26 = scalar_lea.vmem [#allocation7], %s805_s8 }
  0x2a   : > { %s195_s13 = scalar_lea.vmem %s1411_s3, %s807_s9 }
  0x2b   : > { %v1146_v0 = vld [vmem:[%s195_s13] sm:$0xff]  ;;  %v1148_v1 = vld [vmem:[%s195_s13 + $0x8] sm:$0xff]  ;;  %v1150_v2 = vld [vmem:[%s195_s13 + $0x10] sm:$0xff] }
  0x2c   : > { %v1152_v3 = vld [vmem:[%s195_s13 + $0x18] sm:$0xff]  ;;  %v1154_v4 = vld [vmem:[%s195_s13 + $0x20] sm:$0xff]  ;;  %v1156_v5 = vld [vmem:[%s195_s13 + $0x28] sm:$0xff] }
  0x2d   : > { %223 = vsyncadd [#allocation3], 768  ;;  %v243_v6 = vld [vmem:[%s1409_s1 + $0x78] sm:$0xff]  ;;  %v242_v7 = vld [vmem:[%s1409_s1 + $0x70] sm:$0xff]  ;;  %s1015_s29 = smov 112   ;;  %s1016_s6 = smov 120  }
  0x2e   : > { %244 = vmatpush.msra.mxu0 %v243_v6  ;;  %v241_v8 = vld [vmem:[%s1409_s1 + $0x68] sm:$0xff]  ;;  %v240_v9 = vld [vmem:[%s1409_s1 + $0x60] sm:$0xff]  ;;  %v239_v10 = vld [vmem:[%s1409_s1 + $0x58] sm:$0xff]  ;;  %s1018_s8 = smov 16  }
  0x2f   : > { %v238_v11 = vld [vmem:[%s1409_s1 + $0x50] sm:$0xff]  ;;  %v237_v12 = vld [vmem:[%s1409_s1 + $0x48] sm:$0xff]  ;;  %v236_v13 = vld [vmem:[%s1409_s1 + $0x40] sm:$0xff] }
  0x30   : > { %245 = vmatpush.msra.mxu0 %v242_v7  ;;  %v235_v14 = vld [vmem:[%s1409_s1 + $0x38] sm:$0xff]  ;;  %v234_v15 = vld [vmem:[%s1409_s1 + $0x30] sm:$0xff]  ;;  %v233_v16 = vld [vmem:[%s1409_s1 + $0x28] sm:$0xff] }
  0x31   : > { %v232_v17 = vld [vmem:[%s1409_s1 + $0x20] sm:$0xff]  ;;  %v231_v18 = vld [vmem:[%s1409_s1 + $0x18] sm:$0xff]  ;;  %v230_v19 = vld [vmem:[%s1409_s1 + $0x10] sm:$0xff] }
  0x32   : > { %246 = vmatpush.msra.mxu0 %v241_v8  ;;  %v229_v20 = vld [vmem:[%s1409_s1 + $0x8] sm:$0xff]  ;;  %v228_v21 = vld [vmem:[%s1409_s1] sm:$0xff]  ;;  %v226_v24 = vld [vmem:[%s1134_s14 + $0x10] sm:$0xff] }
  0x33   : > { %v224_v22 = vld [vmem:[%s1134_s14] sm:$0xff]  ;;  %v225_v23 = vld [vmem:[%s1134_s14 + $0x8] sm:$0xff]  ;;  %v227_v25 = vld [vmem:[%s1134_s14 + $0x18] sm:$0xff]  ;;  %s1017_s14 = smov 8  }
  0x34   : > { %247 = vmatpush.msra.mxu0 %v240_v9 }
  0x36   : > { %248 = vmatpush.msra.mxu0 %v239_v10 }
  0x38   : > { %249 = vmatpush.msra.mxu0 %v238_v11 }
  0x3a   : > { %250 = vmatpush.msra.mxu0 %v237_v12 }
  0x3c   : > { %251 = vmatpush.msra.mxu0 %v236_v13 }
  0x3e   : > { %252 = vmatpush.msra.mxu0 %v235_v14 }
  0x40   : > { %253 = vmatpush.msra.mxu0 %v234_v15 }
  0x42   : > { %254 = vmatpush.msra.mxu0 %v233_v16 }
  0x44   : > { %255 = vmatpush.msra.mxu0 %v232_v17 }
  0x46   : > { %256 = vmatpush.msra.mxu0 %v231_v18 }
  0x48   : > { %257 = vmatpush.msra.mxu0 %v230_v19 }
  0x4a   : > { %258 = vmatpush.msra.mxu0 %v229_v20 }
  0x4c   : > { %259 = vmatpush.msra.mxu0 %v228_v21 }
  0x4d   : > { %260 = vmatmul.f32.vlgmr.msra.gmra.mxu0 %v224_v22 }
  0x55   : > { %263 = vmatmul.f32.gmra.mxu0 %v225_v23 }
  0x5d   : > { %266 = vmatmul.f32.gmra.mxu0 %v226_v24 }
  0x65   : > { %269 = vmatmul.f32.gmra.mxu0 %v227_v25 }
  0xca   : > { %v1212_v26 = vpop.f32.mrf.mxu0 }
  0xcb   : > { %293 = vrot.lane.b32.xlu2 %v1212_v26, %s1015_s29  ;;  %277 = vrot.lane.b32.xlu0 %v1212_v26, %s1016_s6 }
  0xd2   : > { %v1218_v27 = vpop.f32.mrf.mxu0 }
  0xd3   : > { %295 = vrot.lane.b32.xlu2 %v1218_v27, %s1015_s29  ;;  %279 = vrot.lane.b32.xlu0 %v1218_v27, %s1016_s6 }
  0xda   : > { %v1224_v28 = vpop.f32.mrf.mxu0 }
  0xdb   : > { %297 = vrot.lane.b32.xlu0 %v1224_v28, %s1015_s29  ;;  %281 = vrot.lane.b32.xlu1 %v1224_v28, %s1016_s6 }
  0xe2   : > { %v1230_v29 = vpop.f32.mrf.mxu0 }
  0xe3   : > { %283 = vrot.lane.b32.xlu1 %v1230_v29, %s1016_s6 }
  0xeb   : > { %299 = vrot.lane.b32.xlu1 %v1230_v29, %s1015_s29 }
 0x125   : > { %v294_v30 = vpop.permute.xlu2 %293 }
 0x12d   : > { %v296_v36 = vpop.permute.xlu2 %295 }
 0x13d   : > { %v278_v31 = vpop.permute.xlu0 %277 }
 0x13e   : > { %v289_v32 = vmax.f32 %v1212_v26, %v278_v31 }
 0x140   : > { %v1237_v33 = vmax.f32 %v289_v32, %v294_v30 }
 0x142   : > { %325 = vrot.lane.b32.xlu2 %v1237_v33, %s1017_s14  ;;  %349 = vrot.lane.b32.xlu0 %v1237_v33, %s1018_s8  ;;  %v309_v20 = vsub.f32 %v1212_v26, %v1237_v33 }
 0x144   : > { %v313_v21 = vmul.f32 1.442695, %v309_v20 }
 0x145   : > { %v280_v34 = vpop.permute.xlu0 %279 }
 0x146   : > { %v290_v35 = vmax.f32 %v1218_v27, %v280_v34 }
 0x148   : > { %v1244_v37 = vmax.f32 %v290_v35, %v296_v36 }
 0x14a   : > { %327 = vrot.lane.b32.xlu0 %v1244_v37, %s1017_s14 }
 0x14d   : > { %v282_v38 = vpop.permute.xlu1 %281  ;;  %v298_v40 = vpop.permute.xlu0 %297 }
 0x14e   : > { %v291_v39 = vmax.f32 %v1224_v28, %v282_v38 }
 0x150   : > { %v1249_v41 = vmax.f32 %v291_v39, %v298_v40 }
 0x152   : > { %329 = vrot.lane.b32.xlu1 %v1249_v41, %s1017_s14 }
 0x155   : > { %v284_v42 = vpop.permute.xlu1 %283 }
 0x156   : > { %v292_v43 = vmax.f32 %v1230_v29, %v284_v42 }
 0x15a   : > { %351 = vrot.lane.b32.xlu1 %v1244_v37, %s1018_s8 }
 0x15d   : > { %v300_v44 = vpop.permute.xlu1 %299 }
 0x15e   : > { %v1256_v45 = vmax.f32 %v292_v43, %v300_v44 }
 0x160   : > { %355 = vrot.lane.b32.xlu0 %v1256_v45, %s1018_s8  ;;  %331 = vrot.lane.b32.xlu2 %v1256_v45, %s1017_s14  ;;  %v312_v36 = vsub.f32 %v1230_v29, %v1256_v45 }
 0x162   : > { %v319_v33 = vmul.f32 1.442695, %v312_v36 }
 0x168   : > { %353 = vrot.lane.b32.xlu2 %v1249_v41, %s1018_s8 }
 0x19c   : > { %v326_v46 = vpop.permute.xlu2 %325 }
 0x19d   : > { %v337_v47 = vsub.f32 %v1212_v26, %v326_v46 }
 0x19f   : > { %v341_v48 = vmul.f32 1.442695, %v337_v47 }
 0x1a1   : > { %881 = vpow2.f32 %v341_v48 }
 0x1a7   : > { %v1265_v49 = vpop.eup %881 }
 0x1a8   : > { %377 = vrot.lane.b32.xlu1 %v1265_v49, %s1016_s6 }
 0x1b4   : > { %v350_v50 = vpop.permute.xlu0 %349 }
 0x1b5   : > { %v361_v51 = vsub.f32 %v1212_v26, %v350_v50 }
 0x1b7   : > { %v365_v52 = vmul.f32 1.442695, %v361_v51  ;;  %v310_v51 = vsub.f32 %v1218_v27, %v1244_v37 }
 0x1b9   : > { %883 = vpow2.f32 %v365_v52 }
 0x1ba   : > { %v332_v53 = vpop.permute.xlu2 %331 }
 0x1bb   : > { %v340_v54 = vsub.f32 %v1230_v29, %v332_v53 }
 0x1bc   : > { %v328_v55 = vpop.permute.xlu0 %327 }
 0x1bd   : > { %v347_v56 = vmul.f32 1.442695, %v340_v54  ;;  %v338_v57 = vsub.f32 %v1218_v27, %v328_v55  ;;  %v315_v54 = vmul.f32 1.442695, %v310_v51 }
 0x1bf   : > { %v1272_v58 = vpop.eup %883  ;;  %885 = vpow2.f32 %v347_v56  ;;  %v343_v59 = vmul.f32 1.442695, %v338_v57 }
 0x1c0   : > { %397 = vrot.lane.b32.xlu2 %v1272_v58, %s1015_s29 }
 0x1c1   : > { %887 = vpow2.f32 %v343_v59 }
 0x1c2   : > { %v354_v60 = vpop.permute.xlu2 %353 }
 0x1c3   : > { %v363_v61 = vsub.f32 %v1224_v28, %v354_v60 }
 0x1c4   : > { %v330_v62 = vpop.permute.xlu1 %329 }
 0x1c5   : > { %v1277_v63 = vpop.eup %885  ;;  %v369_v6 = vmul.f32 1.442695, %v363_v61  ;;  %v339_v7 = vsub.f32 %v1224_v28, %v330_v62 }
 0x1c6   : > { %383 = vrot.lane.b32.xlu1 %v1277_v63, %s1016_s6 }
 0x1c7   : > { %v1282_v8 = vpop.eup %887  ;;  %889 = vpow2.f32 %v369_v6  ;;  %v345_v9 = vmul.f32 1.442695, %v339_v7 }
 0x1c8   : > { %379 = vrot.lane.b32.xlu2 %v1282_v8, %s1016_s6 }
 0x1c9   : > { %891 = vpow2.f32 %v345_v9 }
 0x1cc   : > { %v352_v10 = vpop.permute.xlu1 %351 }
 0x1cd   : > { %v1286_v11 = vpop.eup %889  ;;  %v362_v12 = vsub.f32 %v1218_v27, %v352_v10 }
 0x1ce   : > { %401 = vrot.lane.b32.xlu1 %v1286_v11, %s1015_s29 }
 0x1cf   : > { %v1291_v13 = vpop.eup %891  ;;  %v367_v14 = vmul.f32 1.442695, %v362_v12 }
 0x1d0   : > { %381 = vrot.lane.b32.xlu0 %v1291_v13, %s1016_s6 }
 0x1d1   : > { %893 = vpow2.f32 %v367_v14 }
 0x1d2   : > { %v356_v15 = vpop.permute.xlu0 %355 }
 0x1d3   : > { %v364_v16 = vsub.f32 %v1230_v29, %v356_v15  ;;  %v311_v29 = vsub.f32 %v1224_v28, %v1249_v41 }
 0x1d5   : > { %v371_v17 = vmul.f32 1.442695, %v364_v16  ;;  %v317_v47 = vmul.f32 1.442695, %v311_v29 }
 0x1d7   : > { %v1296_v18 = vpop.eup %893  ;;  %895 = vpow2.f32 %v371_v17 }
 0x1d8   : > { %399 = vrot.lane.b32.xlu0 %v1296_v18, %s1015_s29  ;;  %897 = vpow2.f32 %v313_v21 }
 0x1dd   : > { %v1300_v19 = vpop.eup %895 }
 0x1de   : > { %403 = vrot.lane.b32.xlu2 %v1300_v19, %s1015_s29  ;;  %v898_v22 = vpop.eup %897 }
 0x21a   : > { %v378_v23 = vpop.permute.xlu1 %377  ;;  %v398_v25 = vpop.permute.xlu2 %397 }
 0x21b   : > { %v389_v24 = vadd.f32 %v898_v22, %v378_v23 }
 0x21d   : > { %v409_v30 = vadd.f32 %v398_v25, %v389_v24 }
 0x21f   : > { %899 = vrcp.f32 %v409_v30  ;;  %v424_v35 = vand.u32 2147483648, %v409_v30  ;;  %v422_v39 = vand.u32 2147483647, %v409_v30  ;;  %vm418_vm1 = vweird.f32 %v409_v30 }
 0x220   : > { %901 = vpow2.f32 %v319_v33 }
 0x221   : > { %v425_v26 = vor.u32 1.1754944e-38, %v424_v35  ;;  %vm423_vm3 = vcmp.eq.f32.partialorder %v422_v39, 8.507059e+37  ;;  %903 = vpow2.f32 %v317_v47 }
 0x222   : > { %v380_v46 = vpop.permute.xlu2 %379 }
 0x225   : > { %v900_v31 = vpop.eup %899 }
 0x226   : > { %v414_v32 = vmul.f32 %v900_v31, %v409_v30  ;;  %vm419_vm0 = vweird.f32 %v900_v31  ;;  %v902_v45 = vpop.eup %901 }
 0x227   : > { %vm420_vm2 = vmor %vm418_vm1, %vm419_vm0  ;;  %v904_v55 = vpop.eup %903 }
 0x228   : > { %v415_v34 = vsub.f32 1.0, %v414_v32 }
 0x22a   : > { %v416_v38 = vmul.f32 %v900_v31, %v415_v34 }
 0x22c   : > { %v417_v40 = vadd.f32 %v900_v31, %v416_v38 }
 0x22e   : > { %v421_v42 = vsel %vm420_vm2, %v900_v31, %v417_v40 }
 0x22f   : > { %v426_v43 = vsel %vm423_vm3, %v425_v26, %v421_v42 }
 0x230   : > { %497 = vrot.lane.b32.xlu1 %v426_v43, %s1018_s8  ;;  %v1309_v44 = vmul.f32 %v898_v22, %v426_v43  ;;  %481 = vrot.lane.b32.xlu0 %v426_v43, %s1017_s14 }
 0x238   : > { %v384_v48 = vpop.permute.xlu1 %383  ;;  %v404_v52 = vpop.permute.xlu2 %403 }
 0x239   : > { %v392_v50 = vadd.f32 %v902_v45, %v384_v48 }
 0x23b   : > { %v412_v53 = vadd.f32 %v404_v52, %v392_v50 }
 0x23d   : > { %905 = vrcp.f32 %v412_v53  ;;  %v469_v62 = vand.u32 2147483648, %v412_v53  ;;  %v467_v27 = vand.u32 2147483647, %v412_v53  ;;  %vm463_vm5 = vweird.f32 %v412_v53 }
 0x23e   : > { %907 = vpow2.f32 %v315_v54  ;;  %v513_v54 = vld [vmem:[%s1410_s2] sm:$0xff] }
 0x23f   : > { %v470_v14 = vor.u32 1.1754944e-38, %v469_v62  ;;  %vm468_vm7 = vcmp.eq.f32.partialorder %v467_v27, 8.507059e+37 }
 0x240   : > { %v402_v60 = vpop.permute.xlu1 %401 }
 0x242   : > { %v382_v56 = vpop.permute.xlu0 %381 }
 0x243   : > { %v906_v57 = vpop.eup %905  ;;  %v391_v59 = vadd.f32 %v904_v55, %v382_v56 }
 0x244   : > { %v459_v61 = vmul.f32 %v906_v57, %v412_v53  ;;  %v908_v6 = vpop.eup %907  ;;  %vm464_vm4 = vweird.f32 %v906_v57 }
 0x245   : > { %v411_v28 = vadd.f32 %v402_v60, %v391_v59  ;;  %v390_v37 = vadd.f32 %v908_v6, %v380_v46  ;;  %vm465_vm6 = vmor %vm463_vm5, %vm464_vm4 }
 0x246   : > { %v460_v41 = vsub.f32 1.0, %v459_v61 }
 0x247   : > { %909 = vrcp.f32 %v411_v28  ;;  %v454_v23 = vand.u32 2147483648, %v411_v28  ;;  %v452_v25 = vand.u32 2147483647, %v411_v28  ;;  %vm448_vm9 = vweird.f32 %v411_v28 }
 0x248   : > { %v461_v7 = vmul.f32 %v906_v57, %v460_v41 }
 0x249   : > { %v455_v34 = vor.u32 1.1754944e-38, %v454_v23  ;;  %vm453_vm11 = vcmp.eq.f32.partialorder %v452_v25, 8.507059e+37 }
 0x24a   : > { %v400_v9 = vpop.permute.xlu0 %399  ;;  %v462_v10 = vadd.f32 %v906_v57, %v461_v7 }
 0x24b   : > { %v410_v12 = vadd.f32 %v400_v9, %v390_v37 }
 0x24c   : > { %v466_v15 = vsel %vm465_vm6, %v906_v57, %v462_v10 }
 0x24d   : > { %v910_v16 = vpop.eup %909  ;;  %911 = vrcp.f32 %v410_v12  ;;  %v471_v17 = vsel %vm468_vm7, %v470_v14, %v466_v15  ;;  %v439_v39 = vand.u32 2147483648, %v410_v12  ;;  %v437_v33 = vand.u32 2147483647, %v410_v12 }
 0x24e   : > { %487 = vrot.lane.b32.xlu0 %v471_v17, %s1017_s14  ;;  %v1317_v20 = vmul.f32 %v902_v45, %v471_v17  ;;  %v444_v21 = vmul.f32 %v910_v16, %v411_v28  ;;  %vm449_vm8 = vweird.f32 %v910_v16  ;;  %vm433_vm13 = vweird.f32 %v410_v12 }
 0x24f   : > { %vm450_vm10 = vmor %vm448_vm9, %vm449_vm8  ;;  %v440_v43 = vor.u32 1.1754944e-38, %v439_v39  ;;  %vm438_vm15 = vcmp.eq.f32.partialorder %v437_v33, 8.507059e+37 }
 0x250   : > { %v445_v22 = vsub.f32 1.0, %v444_v21 }
 0x252   : > { %v446_v24 = vmul.f32 %v910_v16, %v445_v22 }
 0x253   : > { %v912_v30 = vpop.eup %911 }
 0x254   : > { %v447_v31 = vadd.f32 %v910_v16, %v446_v24  ;;  %v429_v32 = vmul.f32 %v912_v30, %v410_v12  ;;  %vm434_vm12 = vweird.f32 %v912_v30 }
 0x255   : > { %vm435_vm14 = vmor %vm433_vm13, %vm434_vm12 }
 0x256   : > { %v451_v35 = vsel %vm450_vm10, %v910_v16, %v447_v31  ;;  %v430_v36 = vsub.f32 1.0, %v429_v32 }
 0x257   : > { %v456_v38 = vsel %vm453_vm11, %v455_v34, %v451_v35 }
 0x258   : > { %501 = vrot.lane.b32.xlu0 %v456_v38, %s1018_s8  ;;  %v475_v40 = vmul.f32 %v904_v55, %v456_v38  ;;  %485 = vrot.lane.b32.xlu2 %v456_v38, %s1017_s14  ;;  %v431_v26 = vmul.f32 %v912_v30, %v430_v36 }
 0x25a   : > { %v432_v42 = vadd.f32 %v912_v30, %v431_v26 }
 0x25c   : > { %v436_v46 = vsel %vm435_vm14, %v912_v30, %v432_v42 }
 0x25d   : > { %v441_v29 = vsel %vm438_vm15, %v440_v43, %v436_v46 }
 0x25e   : > { %v474_v45 = vmul.f32 %v908_v6, %v441_v29  ;;  %483 = vrot.lane.b32.xlu1 %v441_v29, %s1017_s14 }
 0x260   : > { %499 = vrot.lane.b32.xlu2 %v441_v29, %s1018_s8 }
 0x266   : > { %503 = vrot.lane.b32.xlu1 %v471_v17, %s1018_s8 }
 0x2a2   : > { %v482_v47 = vpop.permute.xlu0 %481  ;;  %v498_v48 = vpop.permute.xlu1 %497 }
 0x2a3   : > { %v493_v50 = vmul.f32 %v1265_v49, %v482_v47  ;;  %v509_v51 = vmul.f32 %v1272_v58, %v498_v48 }
 0x2a5   : > { %575 = vrot.lane.b32.xlu0 %v493_v50, %s1016_s6 }
 0x2b2   : > { %v486_v52 = vpop.permute.xlu2 %485 }
 0x2b3   : > { %v495_v53 = vmul.f32 %v1291_v13, %v486_v52 }
 0x2ba   : > { %v500_v55 = vpop.permute.xlu2 %499 }
 0x2bb   : > { %v510_v56 = vmul.f32 %v1296_v18, %v500_v55 }
 0x2c0   : > { %v488_v57 = vpop.permute.xlu0 %487 }
 0x2c1   : > { %v496_v59 = vmul.f32 %v1277_v63, %v488_v57 }
 0x2ca   : > { %v502_v60 = vpop.permute.xlu0 %501 }
 0x2cb   : > { %v511_v61 = vmul.f32 %v1286_v11, %v502_v60 }
 0x2d0   : > { %v484_v28 = vpop.permute.xlu1 %483 }
 0x2d1   : > { %v494_v49 = vmul.f32 %v1282_v8, %v484_v28 }
 0x2d3   : > { %577 = vrot.lane.b32.xlu1 %v494_v49, %s1016_s6 }
 0x2d8   : > { %v504_v58 = vpop.permute.xlu1 %503 }
 0x2d9   : > { %v512_v41 = vmul.f32 %v1300_v19, %v504_v58 }
 0x2da   : > { %991 = dma.done.wait [#allocation3], 768 }
 0x2db   : > { %992 = vsyncadd [#allocation3], 4294966528  ;;  %579 = vrot.lane.b32.xlu2 %v495_v53, %s1016_s6  ;;  %606 = vmatpush.msra.mxu2 %v513_v54  ;;  %vm517_vm0 = vcmask 64512   ;;  %s709_s20 = scalar_lea.hbm %s1412_s4, %s807_s9  ;;  %s710_s22 = sshll.u32 %s1158_s26, 4  ;;  %s711_s22 = int_to_ptr.vmem [resolvable:$true] %s710_s22 }
 0x2dc   : > { %545 = vmatpush.msra.mxu1 %v513_v54  ;;  %667 = vmatpush.msra.mxu3 %v513_v54  ;;  %s712_s23 = sshll.u32 %s709_s20, 4  ;;  %s698_s25 = scalar_lea.sflag [#allocation6], %s1130_s7  ;;  %s713_s23 = int_to_ptr.hbm [resolvable:$true] %s712_s23 }
 0x2dd   : > { %636 = vrot.lane.b32.xlu0 %v509_v51, %s1015_s29  ;;  %638 = vrot.lane.b32.xlu1 %v510_v56, %s1015_s29  ;;  %s957_s30 = sshra.s32 %s713_s23, 4  ;;  %s958_s30 = int_to_ptr.hbm [resolvable:$true] %s957_s30 }
 0x2de   : > { %808 = vmatmul.msk.f32.vlgmr.msra.gmra.mxu1 %vm517_vm0, %v1309_v44  ;;  %s959_s5 = scalar_lea.hbm %s958_s30, 32  ;;  %p964_p0 = scmp.lt.s32.totalorder %s958_s30, %s1412_s4 }
 0x2df   : > { %p960_p6 = scmp.ne.s32.totalorder %s958_s30, %s959_s5 }
 0x2e1   : > { %p961_p12 = pnand %p960_p6, %p1094_p10 }
 0x2e3   : > { %640 = vrot.lane.b32.xlu2 %v511_v61, %s1015_s29  ;;  %p962_p13 = pneg %p961_p12 }
 0x2e5   : > { %581 = vrot.lane.b32.xlu0 %v496_v59, %s1016_s6  ;;  %642 = vrot.lane.b32.xlu1 %v512_v41, %s1015_s29  ;;  %s963_s29 = scalar_lea.hbm %s1412_s4, 128 }
 0x2e6   : > { %809 = vmatmul.msk.f32.gmra.mxu1 %vm517_vm0, %v474_v45  ;;  %p965_p2 = scmp.lt.s32.totalorder %s963_s29, %s959_s5 }
 0x2e8   : > { %p966_p3 = por %p965_p2, %p964_p0 }
 0x2ea   : > { %p967_p4 = pnand %p966_p3, %p962_p13 }
 0x2ee   : > { %810 = vmatmul.msk.f32.gmra.mxu1 %vm517_vm0, %v475_v40 }
 0x2f6   : > { %811 = vmatmul.msk.f32.gmra.mxu1 %vm517_vm0, %v1317_v20 }
 0x317   : > { %v576_v63 = vpop.permute.xlu0 %575 }
 0x318   : > { %812 = vmatmul.msk.f32.vlgmr.msra.gmra.mxu2 %vm517_vm0, %v576_v63 }
 0x335   : > { %v580_v13 = vpop.permute.xlu2 %579 }
 0x33d   : > { %v641_v19 = vpop.permute.xlu2 %640 }
 0x345   : > { %v578_v8 = vpop.permute.xlu1 %577 }
 0x346   : > { %813 = vmatmul.msk.f32.gmra.mxu2 %vm517_vm0, %v578_v8 }
 0x34e   : > { %814 = vmatmul.msk.f32.gmra.mxu2 %vm517_vm0, %v580_v13 }
 0x34f   : > { %v637_v11 = vpop.permute.xlu0 %636  ;;  %v639_v18 = vpop.permute.xlu1 %638 }
 0x350   : > { %816 = vmatmul.msk.f32.vlgmr.msra.gmra.mxu3 %vm517_vm0, %v637_v11 }
 0x357   : > { %v582_v44 = vpop.permute.xlu0 %581  ;;  %v643_v62 = vpop.permute.xlu1 %642 }
 0x358   : > { %817 = vmatmul.msk.f32.gmra.mxu3 %vm517_vm0, %v639_v18  ;;  %815 = vmatmul.msk.f32.gmra.mxu2 %vm517_vm0, %v582_v44 }
 0x35b   : > { %v547_v6 = vpop.f32.mrf.mxu1 }
 0x35c   : > { %v563_v27 = vmul.f32 %v547_v6, %v1146_v0 }
 0x360   : > { %818 = vmatmul.msk.f32.gmra.mxu3 %vm517_vm0, %v641_v19 }
 0x363   : > { %v550_v9 = vpop.f32.mrf.mxu1 }
 0x364   : > { %v564_v17 = vmul.f32 %v550_v9, %v1148_v1 }
 0x368   : > { %819 = vmatmul.msk.f32.gmra.mxu3 %vm517_vm0, %v643_v62 }
 0x36b   : > { %v553_v21 = vpop.f32.mrf.mxu1 }
 0x36c   : > { %v565_v30 = vmul.f32 %v553_v21, %v1150_v2 }
 0x373   : > { %v556_v32 = vpop.f32.mrf.mxu1 }
 0x374   : > { %v566_v39 = vmul.f32 %v556_v32, %v1152_v3 }
 0x39b   : > { %v608_v7 = vpop.f32.mrf.mxu2 }
 0x39c   : > { %v624_v37 = vmul.f32 %v608_v7, %v1148_v1 }
 0x39e   : > { %v628_v14 = vadd.f32 %v624_v37, %v563_v27 }
 0x3c9   : > { %v611_v10 = vpop.f32.mrf.mxu2 }
 0x3ca   : > { %v625_v20 = vmul.f32 %v611_v10, %v1150_v2 }
 0x3cc   : > { %v629_v0 = vadd.f32 %v625_v20, %v564_v17 }
 0x3d1   : > { %v614_v22 = vpop.f32.mrf.mxu2 }
 0x3d2   : > { %v626_v31 = vmul.f32 %v614_v22, %v1152_v3 }
 0x3d3   : > { %v669_v12 = vpop.f32.mrf.mxu3 }
 0x3d4   : > { %v685_v15 = vmul.f32 %v669_v12, %v1150_v2  ;;  %v630_v35 = vadd.f32 %v626_v31, %v565_v30 }
 0x3d6   : > { %v689_v16 = vadd.f32 %v685_v15, %v628_v14 }
 0x3d8   : > { %693 = vst [vmem:[%s1158_s26] sm:$0xff] %v689_v16 }
 0x3db   : > { %v672_v23 = vpop.f32.mrf.mxu3  ;;  %v617_v34 = vpop.f32.mrf.mxu2 }
 0x3dc   : > { %v686_v24 = vmul.f32 %v672_v23, %v1152_v3  ;;  %v627_v40 = vmul.f32 %v617_v34, %v1154_v4 }
 0x3de   : > { %v690_v25 = vadd.f32 %v686_v24, %v629_v0  ;;  %v631_v2 = vadd.f32 %v627_v40, %v566_v39 }
 0x3e0   : > { %694 = vst [vmem:[%s1158_s26 + $0x8] sm:$0xff] %v690_v25 }
 0x3e3   : > { %v675_v1 = vpop.f32.mrf.mxu3 }
 0x3e4   : > { %v687_v36 = vmul.f32 %v675_v1, %v1154_v4 }
 0x3e6   : > { %v691_v38 = vadd.f32 %v687_v36, %v630_v35 }
 0x3e8   : > { %695 = vst [vmem:[%s1158_s26 + $0x10] sm:$0xff] %v691_v38 }
 0x3eb   : > { %v678_v26 = vpop.f32.mrf.mxu3 }
 0x3ec   : > { %v688_v33 = vmul.f32 %v678_v26, %v1156_v5 }
 0x3ee   : > { %v692_v42 = vadd.f32 %v688_v33, %v631_v2 }
 0x3f0   : > { %696 = vst [vmem:[%s1158_s26 + $0x18] sm:$0xff] %v692_v42 }
 0x3f1   : > { %970 = shalt.err (!%p967_p4)
}
 0x3f2   : > { %s1019_s7 = smov 128  }
 0x3f3   : > { %830 = dma.vmem_to_hbm [thread:$0]  (%p1094_p10), %s711_s22, 512, %s713_s23, %s698_s25, %s1019_s7, %s1019_s7, %s1017_s14  }
 0x3f4 PF: > { %p841_p5 = scmp.ge.s32.totalorder %s1011_s18, 2  ;;  %s727_s26 = sand.u32 1, %s999_s15  }
 0x3f5   : > { %s728_s10 = scalar_lea.sflag [#allocation6], %s727_s26 }
 0x3f6   : > { %p837_p7 = pnand %p841_p5, %p1098_p11 }
 0x3f8   : > { %p838_p8 = pneg %p837_p7 }
 0x3fa   : > { %994 = dma.done.wait (%p838_p8), %s728_s10, 512  }
 0x3fb   : > { %996 = vsyncadd (%p838_p8), %s728_s10, 4294966784  ;;  %p17_p9 = scmp.ge.s32.totalorder %s1070_s21, 6   ;;  %s1418_s15 = smov %s1003_s16 }
 0x3fc   : > { %s1419_s16 = smov %s1007_s17  ;;  %s1420_s17 = smov %s1082_s24 }
 0x3fd   : > { %s1421_s18 = smov %s1070_s21  ;;  %19 = sbr.rel (!%p17_p9) target bundleno = 5 (0x5), region = 101 }
 0x402   :  { %734 = vsyncpa [#allocation5], 1 }
 0x403   :  { %736 = vsyncpa [#allocation5 + $0x1], 1 }
 0x404   :  { %737 = vsyncpa [#allocation6], 1 }
 0x405   :  { %739 = vsyncpa [#allocation6 + $0x1], 1 }
 0x406   :  { %740 = vsyncmov [#allocation3] }
 0x409   :  { %s741_s18 = vpop.sfrf %740 }
 0x40a   :  { %p825_p10 = scmp.ne.s32.totalorder %s741_s18, 0 }
 0x40c   :  { %745 = shalt.err (%p825_p10)  }

</bundles_post_ra>
